<compile_context>
chip_gen: v5e
topology: v5e:2x2
jax: 0.10.0
libtpu: 0.0.40
codegen_flags: <defaults>
</compile_context>

<pallas_src>
import functools

import jax
import jax.numpy as jnp
from jax.experimental import pallas as pl
from jax.experimental.pallas import tpu as pltpu


def _pwconv_kernel(x_ref, w_ref, o_ref, sum_ref, ssq_ref, *, hw, t_hw, needs_mask):
    # x_ref: (1, Cin, T_HW), w_ref: (Cout, Cin), o_ref: (1, Cout, T_HW)
    # sum_ref / ssq_ref: (Cout, 1) f32 scratch (persist across the hw/pass axes).
    p = pl.program_id(1)   # 0 = statistics pass, 1 = normalize+write pass
    j = pl.program_id(2)   # hw tile index

    # 1x1 conv == channel-mixing matmul on the MXU. Operands stay in their
    # native dtype (no explicit upcast); accumulation is f32.
    y = jnp.dot(w_ref[...], x_ref[0],
                preferred_element_type=jnp.float32)      # (Cout, T_HW) f32

    @pl.when((p == 0) & (j == 0))
    def _init():
        sum_ref[...] = jnp.zeros_like(sum_ref)
        ssq_ref[...] = jnp.zeros_like(ssq_ref)

    @pl.when(p == 0)
    def _stats():
        if needs_mask:
            col = jax.lax.broadcasted_iota(jnp.int32, (1, t_hw), 1) + j * t_hw
            ym = jnp.where(col < hw, y, 0.0)
        else:
            ym = y
        sum_ref[...] = sum_ref[...] + jnp.sum(ym, axis=-1, keepdims=True)
        ssq_ref[...] = ssq_ref[...] + jnp.sum(ym * ym, axis=-1, keepdims=True)

    @pl.when(p == 1)
    def _finalize():
        inv_n = 1.0 / hw
        mean = sum_ref[...] * inv_n                       # (Cout, 1)
        var = ssq_ref[...] * inv_n - mean * mean          # biased variance
        rstd = jax.lax.rsqrt(var + 1e-6)
        # Fused affine normalize: yn = y * rstd + (-mean * rstd)
        yn = y * rstd + (-mean * rstd)
        out = yn * jax.nn.sigmoid(yn)                     # SiLU
        o_ref[0] = out.astype(o_ref.dtype)


def _choose_hw_tile(cin, cout, hw, itemsize, max_hw_tile=None,
                    budget_bytes=32 * 1024 * 1024):
    """Largest 128-multiple HW tile whose double-buffered I/O + f32 intermediate
    fits the VMEM budget (v7x-safe)."""
    hw_pad_full = ((hw + 127) // 128) * 128
    per_128 = (2 * (cin + cout) * itemsize + 4 * cout) * 128
    t = max(128, (budget_bytes // per_128) * 128)
    t = min(t, hw_pad_full)
    if max_hw_tile is not None:
        t = min(t, max(128, (max_hw_tile // 128) * 128))
    return t


def pointwise_conv_layer(x_nchw, weight, bias=None, *, max_hw_tile=None):
    """x_nchw: [B, Cin, H, W]; weight: [Cout, Cin] or [Cout, Cin, 1, 1]; bias: [Cout].

    Forward of PointwiseConvLayer: Conv2d(1x1) -> InstanceNorm2d(eps=1e-6) -> SiLU.
    """
    B, Cin, H, W = x_nchw.shape
    if weight.ndim == 4:
        weight = weight.reshape(weight.shape[0], weight.shape[1])
    Cout = weight.shape[0]
    HW = H * W

    # bias is accepted for API parity with nn.Conv2d but intentionally unused:
    # InstanceNorm2d(affine=False) subtracts the per-channel spatial mean, which
    # exactly cancels a per-channel constant, so the conv bias is dead compute.
    del bias

    itemsize = jnp.dtype(x_nchw.dtype).itemsize
    t_hw = _choose_hw_tile(Cin, Cout, HW, itemsize, max_hw_tile)
    n_hw = pl.cdiv(HW, t_hw)
    hw_pad = n_hw * t_hw

    x_flat = x_nchw.reshape(B, Cin, HW)
    if hw_pad != HW:
        x_flat = jnp.pad(x_flat, ((0, 0), (0, 0), (0, hw_pad - HW)))

    kernel = functools.partial(_pwconv_kernel, hw=HW, t_hw=t_hw,
                               needs_mask=(hw_pad != HW))

    out_flat = pl.pallas_call(
        kernel,
        out_shape=jax.ShapeDtypeStruct((B, Cout, hw_pad), x_nchw.dtype),
        grid_spec=pltpu.PrefetchScalarGridSpec(
            num_scalar_prefetch=0,
            # (batch, pass, hw-tile): pass 0 accumulates stats, pass 1 writes output.
            grid=(B, 2, n_hw),
            in_specs=[
                # x tile is read in both passes (cheap matmul is recomputed in
                # pass 1 instead of storing the pre-norm activations).
                pl.BlockSpec((1, Cin, t_hw), lambda b, p, j: (b, 0, j)),
                # Weight stays resident across the whole grid.
                pl.BlockSpec((Cout, Cin), lambda b, p, j: (0, 0)),
            ],
            # During the stats pass the output maps to a constant block (j*p == 0),
            # so nothing is copied back until pass 1 writes real data.
            out_specs=pl.BlockSpec((1, Cout, t_hw), lambda b, p, j: (b, 0, j * p)),
            scratch_shapes=[
                pltpu.VMEM((Cout, 1), jnp.float32),   # per-channel sum
                pltpu.VMEM((Cout, 1), jnp.float32),   # per-channel sum of squares
            ],
        ),
        compiler_params=pltpu.CompilerParams(
            dimension_semantics=("parallel", "arbitrary", "arbitrary"),
            vmem_limit_bytes=48 * 1024 * 1024,
        ),
    )(x_flat, weight)

    return out_flat[:, :, :HW].reshape(B, Cout, H, W)


def _reference(x, weight, bias):
    y = jnp.einsum("oc,bchw->bohw", weight, x) + bias[None, :, None, None]
    mean = y.mean(axis=(2, 3), keepdims=True)
    var = ((y - mean) ** 2).mean(axis=(2, 3), keepdims=True)
    yn = (y - mean) / jnp.sqrt(var + 1e-6)
    return yn * jax.nn.sigmoid(yn)


if __name__ == "__main__":
    key = jax.random.PRNGKey(0)

    # Test 1: B=2, Cin=4, Cout=8, H=W=16.  max_hw_tile=128 forces 2 HW tiles so
    # the multi-tile stats accumulation path is exercised.
    B, Cin, Cout, H, W = 2, 4, 8, 16, 16
    kx, kw, kb, key = jax.random.split(key, 4)
    x = jax.random.normal(kx, (B, Cin, H, W), dtype=jnp.float32)
    weight = jax.random.normal(kw, (Cout, Cin), dtype=jnp.float32) * 0.1
    bias = jax.random.normal(kb, (Cout,), dtype=jnp.float32) * 0.1

    out = pointwise_conv_layer(x, weight, bias, max_hw_tile=128)
    jax.block_until_ready(out)
    ref = _reference(x, weight, bias)
    assert out.shape == ref.shape
    assert jnp.allclose(out, ref, atol=1e-4, rtol=1e-4)

    # Test 2: ragged spatial size (H=W=10 -> HW=100, padded to 128) exercises the
    # padded-lane masking in the statistics pass.
    B2, Cin2, Cout2, H2, W2 = 1, 3, 5, 10, 10
    kx2, kw2, kb2, key = jax.random.split(key, 4)
    x2 = jax.random.normal(kx2, (B2, Cin2, H2, W2), dtype=jnp.float32)
    w2 = jax.random.normal(kw2, (Cout2, Cin2), dtype=jnp.float32) * 0.1
    b2 = jax.random.normal(kb2, (Cout2,), dtype=jnp.float32) * 0.1

    out2 = pointwise_conv_layer(x2, w2, b2)
    jax.block_until_ready(out2)
    ref2 = _reference(x2, w2, b2)
    assert jnp.allclose(out2, ref2, atol=1e-4, rtol=1e-4)

    print("KERNEL_OK")
</pallas_src>

<mosaic_0001>
module attributes {stable_mosaic.version = 11 : i64} {
  func.func @_pwconv_kernel(%arg0: i32, %arg1: i32, %arg2: i32, %arg3: memref<1x4x128xf32, #tpu.memory_space<vmem>>, %arg4: memref<8x4xf32, #tpu.memory_space<vmem>>, %arg5: memref<1x8x128xf32, #tpu.memory_space<vmem>>, %arg6: memref<8x1xf32, #tpu.memory_space<vmem>>, %arg7: memref<8x1xf32, #tpu.memory_space<vmem>>) attributes {dimension_semantics = [#tpu.dimension_semantics<parallel>, #tpu.dimension_semantics<arbitrary>, #tpu.dimension_semantics<arbitrary>], iteration_bounds = array<i64: 2, 2, 2>, scalar_prefetch = 0 : i64, scratch_operands = 2 : i64, tpu.core_type = #tpu.core_type<tc>, window_params = [{transform_indices = @transform_0, window_bounds = array<i64: 1, 4, 128>}, {pipeline_mode = #tpu.pipeline_mode<synchronous>, transform_indices = @transform_1, window_bounds = array<i64: 8, 4>}, {transform_indices = @transform_2, window_bounds = array<i64: 1, 8, 128>}]} {
    %c0 = arith.constant 0 : index
    %c0_0 = arith.constant 0 : index
    %0 = vector.load %arg4[%c0, %c0_0] : memref<8x4xf32, #tpu.memory_space<vmem>>, vector<8x4xf32>
    %c0_1 = arith.constant 0 : index
    %c0_2 = arith.constant 0 : index
    %c0_3 = arith.constant 0 : index
    %1 = vector.load %arg3[%c0_1, %c0_2, %c0_3] : memref<1x4x128xf32, #tpu.memory_space<vmem>>, vector<1x4x128xf32>
    %2 = vector.shape_cast %1 : vector<1x4x128xf32> to vector<4x128xf32>
    %cst = arith.constant dense<0.000000e+00> : vector<8x128xf32>
    %3 = tpu.matmul %0, %2, %cst {dimension_numbers = #tpu.dot_dimension_numbers<[1], [0], [0], [1], [0, 0, 1, 1], [], []>} : vector<8x4xf32>, vector<4x128xf32>, vector<8x128xf32> -> vector<8x128xf32>
    %c0_i32 = arith.constant 0 : i32
    %4 = arith.cmpi eq, %arg1, %c0_i32 : i32
    %c0_i32_4 = arith.constant 0 : i32
    %5 = arith.cmpi eq, %arg2, %c0_i32_4 : i32
    %6 = arith.andi %4, %5 : i1
    %7 = arith.extui %6 : i1 to i32
    %c0_i32_5 = arith.constant 0 : i32
    %8 = arith.cmpi ne, %7, %c0_i32_5 : i32
    scf.if %8 {
      %cst_9 = arith.constant 0.000000e+00 : f32
      %15 = vector.broadcast %cst_9 : f32 to vector<8x1xf32>
      %c0_10 = arith.constant 0 : index
      %c0_11 = arith.constant 0 : index
      %16 = vector.load %arg6[%c0_10, %c0_11] : memref<8x1xf32, #tpu.memory_space<vmem>>, vector<8x1xf32>
      tpu.vector_store %arg6[%c0_10, %c0_11], %15 {strides = array<i32>} : memref<8x1xf32, #tpu.memory_space<vmem>>, vector<8x1xf32>,
      %cst_12 = arith.constant 0.000000e+00 : f32
      %17 = vector.broadcast %cst_12 : f32 to vector<8x1xf32>
      %c0_13 = arith.constant 0 : index
      %c0_14 = arith.constant 0 : index
      %18 = vector.load %arg7[%c0_13, %c0_14] : memref<8x1xf32, #tpu.memory_space<vmem>>, vector<8x1xf32>
      tpu.vector_store %arg7[%c0_13, %c0_14], %17 {strides = array<i32>} : memref<8x1xf32, #tpu.memory_space<vmem>>, vector<8x1xf32>,
    } else {
    }
    %c0_i32_6 = arith.constant 0 : i32
    %9 = arith.cmpi eq, %arg1, %c0_i32_6 : i32
    %10 = arith.extui %9 : i1 to i32
    %c0_i32_7 = arith.constant 0 : i32
    %11 = arith.cmpi ne, %10, %c0_i32_7 : i32
    scf.if %11 {
      %c0_9 = arith.constant 0 : index
      %c0_10 = arith.constant 0 : index
      %15 = vector.load %arg6[%c0_9, %c0_10] : memref<8x1xf32, #tpu.memory_space<vmem>>, vector<8x1xf32>
      %cst_11 = arith.constant dense<0.000000e+00> : vector<8xf32>
      %16 = vector.multi_reduction <add>, %3, %cst_11 [1] : vector<8x128xf32> to vector<8xf32>
      %17 = vector.shape_cast %16 : vector<8xf32> to vector<8x1xf32>
      %18 = arith.addf %15, %17 : vector<8x1xf32>
      %c0_12 = arith.constant 0 : index
      %c0_13 = arith.constant 0 : index
      %19 = vector.load %arg6[%c0_12, %c0_13] : memref<8x1xf32, #tpu.memory_space<vmem>>, vector<8x1xf32>
      tpu.vector_store %arg6[%c0_12, %c0_13], %18 {strides = array<i32>} : memref<8x1xf32, #tpu.memory_space<vmem>>, vector<8x1xf32>,
      %c0_14 = arith.constant 0 : index
      %c0_15 = arith.constant 0 : index
      %20 = vector.load %arg7[%c0_14, %c0_15] : memref<8x1xf32, #tpu.memory_space<vmem>>, vector<8x1xf32>
      %21 = arith.mulf %3, %3 : vector<8x128xf32>
      %cst_16 = arith.constant dense<0.000000e+00> : vector<8xf32>
      %22 = vector.multi_reduction <add>, %21, %cst_16 [1] : vector<8x128xf32> to vector<8xf32>
      %23 = vector.shape_cast %22 : vector<8xf32> to vector<8x1xf32>
      %24 = arith.addf %20, %23 : vector<8x1xf32>
      %c0_17 = arith.constant 0 : index
      %c0_18 = arith.constant 0 : index
      %25 = vector.load %arg7[%c0_17, %c0_18] : memref<8x1xf32, #tpu.memory_space<vmem>>, vector<8x1xf32>
      tpu.vector_store %arg7[%c0_17, %c0_18], %24 {strides = array<i32>} : memref<8x1xf32, #tpu.memory_space<vmem>>, vector<8x1xf32>,
    } else {
    }
    %c1_i32 = arith.constant 1 : i32
    %12 = arith.cmpi eq, %arg1, %c1_i32 : i32
    %13 = arith.extui %12 : i1 to i32
    %c0_i32_8 = arith.constant 0 : i32
    %14 = arith.cmpi ne, %13, %c0_i32_8 : i32
    scf.if %14 {
      %c0_9 = arith.constant 0 : index
      %c0_10 = arith.constant 0 : index
      %15 = vector.load %arg6[%c0_9, %c0_10] : memref<8x1xf32, #tpu.memory_space<vmem>>, vector<8x1xf32>
      %cst_11 = arith.constant 3.906250e-03 : f32
      %16 = vector.broadcast %cst_11 : f32 to vector<8x1xf32>
      %17 = arith.mulf %15, %16 : vector<8x1xf32>
      %c0_12 = arith.constant 0 : index
      %c0_13 = arith.constant 0 : index
      %18 = vector.load %arg7[%c0_12, %c0_13] : memref<8x1xf32, #tpu.memory_space<vmem>>, vector<8x1xf32>
      %cst_14 = arith.constant 3.906250e-03 : f32
      %19 = vector.broadcast %cst_14 : f32 to vector<8x1xf32>
      %20 = arith.mulf %18, %19 : vector<8x1xf32>
      %21 = arith.mulf %17, %17 : vector<8x1xf32>
      %22 = arith.subf %20, %21 : vector<8x1xf32>
      %cst_15 = arith.constant 9.99999997E-7 : f32
      %23 = vector.broadcast %cst_15 : f32 to vector<8x1xf32>
      %24 = arith.addf %22, %23 : vector<8x1xf32>
      %25 = math.rsqrt %24 : vector<8x1xf32>
      %26 = vector.broadcast %25 : vector<8x1xf32> to vector<8x128xf32>
      %27 = arith.mulf %3, %26 : vector<8x128xf32>
      %cst_16 = arith.constant 0.000000e+00 : f32
      %28 = vector.broadcast %cst_16 : f32 to vector<8x1xf32>
      %29 = arith.subf %28, %17 : vector<8x1xf32>
      %30 = arith.mulf %29, %25 : vector<8x1xf32>
      %31 = vector.broadcast %30 : vector<8x1xf32> to vector<8x128xf32>
      %32 = arith.addf %27, %31 : vector<8x128xf32>
      %33 = arith.negf %32 : vector<8x128xf32>
      %34 = math.exp %33 : vector<8x128xf32>
      %cst_17 = arith.constant 1.000000e+00 : f32
      %35 = vector.broadcast %cst_17 : f32 to vector<8x128xf32>
      %36 = arith.addf %35, %34 : vector<8x128xf32>
      %37 = arith.divf %35, %36 : vector<8x128xf32>
      %38 = arith.mulf %32, %37 : vector<8x128xf32>
      %c0_18 = arith.constant 0 : index
      %c0_19 = arith.constant 0 : index
      %c0_20 = arith.constant 0 : index
      %39 = vector.load %arg5[%c0_18, %c0_19, %c0_20] : memref<1x8x128xf32, #tpu.memory_space<vmem>>, vector<1x8x128xf32>
      %40 = vector.shape_cast %39 : vector<1x8x128xf32> to vector<8x128xf32>
      %41 = vector.shape_cast %38 : vector<8x128xf32> to vector<1x8x128xf32>
      tpu.vector_store %arg5[%c0_18, %c0_19, %c0_20], %41 {strides = array<i32>} : memref<1x8x128xf32, #tpu.memory_space<vmem>>, vector<1x8x128xf32>,
    } else {
    }
    return
  }
  func.func @transform_0(%arg0: i32, %arg1: i32, %arg2: i32) -> (i32, i32, i32) {
    %c0_i32 = arith.constant 0 : i32
    %c0_i32_0 = arith.constant 0 : i32
    return %arg0, %c0_i32, %arg2 : i32, i32, i32
  }
  func.func @transform_1(%arg0: i32, %arg1: i32, %arg2: i32) -> (i32, i32) {
    %c0_i32 = arith.constant 0 : i32
    %c0_i32_0 = arith.constant 0 : i32
    %c0_i32_1 = arith.constant 0 : i32
    return %c0_i32, %c0_i32_0 : i32, i32
  }
  func.func @transform_2(%arg0: i32, %arg1: i32, %arg2: i32) -> (i32, i32, i32) {
    %0 = arith.muli %arg2, %arg1 : i32
    %c0_i32 = arith.constant 0 : i32
    %c0_i32_0 = arith.constant 0 : i32
    return %arg0, %c0_i32, %0 : i32, i32, i32
  }
}

</mosaic_0001>

<bundles_post_ra>
// kernel: tpu_custom_call.1
= control target key start
LH: loop header
LB: loop body
LE: loop exit
PB: predicated region body
PF: predicated region fallthrough
CT: control target
= control target key end

     0   :  { %s963_s0 = inlined_call_operand.hbm [shape: f32[2,4,256], index: 0, kind: input, shape index: {}]   ;;  %s964_s1 = inlined_call_operand.vmem [shape: f32[8,4], index: 1, kind: input, shape index: {}]   ;;  %s965_s2 = inlined_call_operand.hbm [shape: f32[2,8,256], index: 2, kind: output, shape index: {}]  }
   0x1   :  { %970 = sst [smem:[#allocation15_spill]] %s963_s0 }
   0x2   :  { %7 = vsyncpa [#allocation5], 0 }
   0x3   :  { %9 = vsyncpa [#allocation5 + $0x1], 0 }
   0x4   :  { %10 = vsyncpa [#allocation6], 0 }
   0x5   :  { %12 = vsyncpa [#allocation6 + $0x1], 0  ;;  %s743_s9 = smov 0   ;;  %s745_s10 = smov 0  }
   0x6   :  { %s747_s11 = smov 0   ;;  %s749_s12 = smov 0  }
   0x7   :  { %s751_s13 = smov 0   ;;  %s753_s14 = smov 0  }
   0x8   :  { %s755_s15 = smov 0   ;;  %s757_s16 = smov 0  }
   0x9   :  { %s759_s17 = smov 0   ;;  %s761_s18 = smov 0  }
   0xa   :  { %s763_s19 = smov 0   ;;  %s765_s20 = smov 0  }
   0xb   :  { %s767_s21 = smov 0  }
   0xc LB: > { %971 = sst [smem:[#allocation10_spill]] %s716_s19  ;;  %s409_s22 = sadd.s32 4294967295, %s724_s21   ;;  %s724_s21 = sphi %s767_s21, %s18_s21   ;;  %s720_s20 = sphi %s765_s20, %s997_s20   ;;  %s716_s19 = sphi %s763_s19, %s986_s19   ;;  %s712_s18 = sphi %s761_s18, %s996_s18   ;;  %s708_s17 = sphi %s759_s17, %s995_s17   ;;  %s704_s16 = sphi %s757_s16, %s984_s16   ;;  %s700_s15 = sphi %s755_s15, %s994_s15   ;;  %s696_s14 = sphi %s753_s14, %s993_s14   ;;  %s692_s13 = sphi %s751_s13, %s992_s13   ;;  %s688_s12 = sphi %s749_s12, %s991_s12   ;;  %s684_s11 = sphi %s747_s11, %s990_s11   ;;  %s680_s10 = sphi %s745_s10, %s989_s10   ;;  %s676_s9 = sphi %s743_s9, %s988_s9  }
   0xd   : > { %s410_s23 = sadd.s32 4294967294, %s724_s21   ;;  %s30_s24 = sadd.s32 1, %s712_s18 }
   0xe   : > { %s33_s25 = sadd.s32 1, %s716_s19  ;;  %p31_p0 = scmp.ge.s32.totalorder %s30_s24, 2 }
   0xf   : > { %s37_s26 = sadd.s32 1, %s720_s20  ;;  %p53_p1 = scmp.ne.s32.totalorder %s696_s14, %s692_s13 }
  0x10   : > { %s999_s24 = smov (%p31_p0, %s30_s24), 0  ;;  %s1001_s25 = smov (!%p31_p0, %s33_s25), %s716_s19 }
  0x11   : > { %972 = sst [smem:[#allocation11_spill]] %s999_s24  ;;  %s42_s28 = ssub.s32 %s712_s18, %s999_s24 }
  0x12   : > { %p54_p2 = scmp.eq.s32.totalorder %s724_s21, 0  ;;  %p35_p3 = scmp.ge.s32.totalorder %s1001_s25, 2 }
  0x13   : > { %p59_p4 = scmp.ne.s32.totalorder %s692_s13, %s688_s12  ;;  %p60_p6 = scmp.eq.s32.totalorder %s409_s22, 0 }
  0x14   : > { %p821_p5 = por %p54_p2, %p53_p1  ;;  %s1003_s25 = smov (%p35_p3, %s1001_s25), 0 }
  0x15   : > { %974 = sst [smem:[#allocation12_spill]] %s1003_s25  ;;  %s1005_s26 = smov (!%p35_p3, %s37_s26), %s720_s20 }
  0x16   : > { %p828_p7 = por %p60_p6, %p59_p4  ;;  %s90_s3 = smul.u32 %s712_s18, %s716_s19 }
  0x17   : > { %p39_p8 = scmp.ge.s32.totalorder %s1005_s26, 2  ;;  %s91_s4 = smul.u32 %s1003_s25, %s999_s24 }
  0x18   : > { %s97_s5 = sadd.s32 1, %s684_s11  ;;  %p107_p9 = scmp.ne.s32.totalorder %s684_s11, %s680_s10 }
  0x19   : > { %s1007_s26 = smov (%p39_p8, %s1005_s26), 0  ;;  %s93_s6 = ssub.s32 %s90_s3, %s91_s4 }
  0x1a   : > { %976 = sst [smem:[#allocation13_spill]] %s1007_s26  ;;  %p108_p10 = scmp.eq.s32.totalorder %s409_s22, 7 }
  0x1b   : > { %s41_s7 = ssub.s32 %s720_s20, %s1007_s26  ;;  %p113_p11 = scmp.ne.s32.totalorder %s680_s10, %s676_s9 }
  0x1c   : > { %s43_s8 = sor.u32 %s42_s28, %s41_s7  ;;  %s94_s12 = sor.u32 %s93_s6, %s41_s7 }
  0x1d   : > { %p44_p12 = scmp.eq.s32.totalorder %s43_s8, 0  ;;  %p95_p13 = scmp.eq.s32.totalorder %s94_s12, 0 }
  0x1e   : > { %p845_p0 = por %p108_p10, %p107_p9  ;;  %p114_p1 = scmp.eq.s32.totalorder %s410_s23, 7 }
  0x1f   : > { %s978_s25 = sadd.s32 1, %s696_s14  ;;  %p441_p3 = scmp.lt.s32.totalorder %s724_s21, 8 }
  0x20   : > { %s854_s24 = scalar_select %p44_p12, %s696_s14, %s978_s25  }
  0x21   : > { %s857_s3 = scalar_select %p95_p13, %s684_s11, %s97_s5  }
  0x22   : > { %979 = sst [smem:[#allocation14_spill]] %s854_s24  ;;  %p859_p2 = por %p114_p1, %p113_p11 }
  0x23   : > { %s137_s28 = sand.u32 1, %s696_s14   ;;  %s414_s6 = sshll.u32 %s720_s20, 1 }
  0x24   : > { %s413_s4 = sshll.u32 %s137_s28, 2  ;;  %s145_s7 = sadd.s32 %s712_s18, %s414_s6 }
  0x25   : > { %s141_s8 = scalar_lea.vmem [#allocation4], %s413_s4  ;;  %s415_s26 = sshll.u32 %s145_s7, 2 }
  0x26   : > { %s151_s12 = sshll.u32 %s141_s8, 4  ;;  %s981_s0 = sld [smem:[#allocation15_spill]]  ;;  %s152_s12 = int_to_ptr.vmem [resolvable:$true] %s151_s12 }
  0x27   : > { %p434_p4 = pnand %p441_p3, %p821_p5  ;;  %p416_p6 = scmp.ge.s32.totalorder %s724_s21, 1 }
  0x28   : > { %s138_s24 = scalar_lea.sflag [#allocation5], %s137_s28  ;;  %p156_p8 = scmp.lt.s32.totalorder %s724_s21, 9 }
  0x2a   : > { %p157_p9 = pnand %p416_p6, %p156_p8 }
  0x2b   : > { %s162_s4 = sand.u32 (!%p157_p9), 1, %s692_s13  }
  0x2c   : > { %s147_s25 = scalar_lea.hbm %s981_s0, %s415_s26  ;;  %160 = sbr.rel (%p157_p9) target bundleno = 524 (0x20c), region = 28 }
  0x2d   : > { %s149_s5 = sshll.u32 %s147_s25, 4  ;;  %s417_s6 = sshll.u32 (!%p157_p9), %s162_s4, 2  ;;  %s150_s5 = int_to_ptr.hbm [resolvable:$true] %s149_s5 }
  0x2e   : > { %436 = dma.hbm_to_vmem [thread:$0]  (!%p434_p4), %s150_s5, 64, %s152_s12, %s138_s24  }
  0x2f   : > { %s163_s7 = scalar_lea.sflag (!%p157_p9), [#allocation5], %s162_s4  ;;  %s166_s8 = scalar_lea.vmem (!%p157_p9), [#allocation4], %s417_s6 }
  0x31   : > { %667 = dma.done.wait (%p828_p7), %s163_s7, 64  }
  0x32   : > { %669 = vsyncadd (%p828_p7), %s163_s7, 4294967232  ;;  %s185_s19 = sand.u32 1, %s680_s10   ;;  %p219_p5 = scmp.eq.s32.totalorder %s704_s16, 0  ;;  %vm195_vm0 = vcmask 1043456   ;;  %vm191_vm1 = vcmask 31744   ;;  %v189_v1 = vld [vmem:[%s964_s1] sm:$0xff] }
  0x33   : > { %s882_s24 = sshll.u32 %s185_s19, 3  ;;  %p220_p10 = scmp.eq.s32.totalorder %s700_s15, 0  ;;  %v190_v0 = vld [vmem:[%s166_s8] sm:$0xf] }
  0x34   : > { %419 = vmatpush.msk.msra.mxu0 %vm195_vm0, %v190_v0  ;;  %s187_s30 = scalar_lea.vmem [#allocation7], %s882_s24 }
  0x35   : > { %p221_p11 = pnand %p220_p10, %p219_p5  ;;  %420 = vmatmul.msk.f32.vlgmr.msra.gmra.mxu0 %vm191_vm1, %v189_v1 }
  0xae   : > { %224 = sbr.rel (%p221_p11) target bundleno = 182 (0xb6), region = 36 }
  0xb2   : > { %v216_v2 = vpop.f32.mrf.mxu0 }
  0xb3   : > { %vm225_vm2 = vcmask 7168   ;;  %v726_v3 = vmov 0.0  }
  0xb4   : > { %226 = vst.msk [vmem:[#allocation2] sm:$0xff] %vm225_vm2, %v726_v3 }
  0xb5   : > { %227 = vst.msk [vmem:[#allocation3] sm:$0xff] %vm225_vm2, %v726_v3 }
  0xb6 PF: > { %p421_p7 = scmp.ne.s32.totalorder %s704_s16, 0 }
  0xb8   : > { %230 = sbr.rel (%p421_p7) target bundleno = 316 (0x13c), region = 40 }
  0xbd   : > { %232 = vadd.xlane.f32.xlu0 %v216_v2  ;;  %v238_v4 = vmul.f32 %v216_v2, %v216_v2  ;;  %v231_v5 = vld [vmem:[#allocation2] sm:$0xff]  ;;  %vm235_vm3 = vcmask 7168   ;;  %v237_v8 = vld [vmem:[#allocation3] sm:$0xff] }
  0xc5   : > { %239 = vadd.xlane.f32.xlu0 %v238_v4 }
 0x130   : > { %v233_v6 = vpop.xlane.xlu0 %232 }
 0x131   : > { %v234_v7 = vadd.f32 %v233_v6, %v231_v5 }
 0x133   : > { %236 = vst.msk [vmem:[#allocation2] sm:$0xff] %vm235_vm3, %v234_v7 }
 0x138   : > { %v240_v9 = vpop.xlane.xlu0 %239 }
 0x139   : > { %v241_v10 = vadd.f32 %v240_v9, %v237_v8 }
 0x13b   : > { %242 = vst.msk [vmem:[#allocation3] sm:$0xff] %vm235_vm3, %v241_v10 }
 0x13c PF: > { %p422_p12 = scmp.ne.s32.totalorder %s704_s16, 1 }
 0x13e   : > { %246 = sbr.rel (%p422_p12) target bundleno = 506 (0x1fa), region = 44 }
 0x143   : > { %v247_v11 = vld [vmem:[#allocation2] sm:$0xff]  ;;  %v249_v12 = vld [vmem:[#allocation3] sm:$0xff]  ;;  %v727_v13 = vmov 0  }
 0x144   : > { %549 = vset.pattern.permute.xlu0 %v727_v13  ;;  %v248_v14 = vmul.f32 0.00390625, %v247_v11  ;;  %v250_v15 = vmul.f32 0.00390625, %v249_v12 }
 0x146   : > { %v251_v16 = vmul.f32 %v248_v14, %v248_v14  ;;  %v270_v26 = vsub.f32 0.0, %v248_v14 }
 0x148   : > { %v252_v17 = vsub.f32 %v250_v15, %v251_v16 }
 0x14a   : > { %v253_v18 = vadd.f32 1e-06, %v252_v17 }
 0x14c   : > { %550 = vrsqrt.f32 %v253_v18  ;;  %vm260_vm4 = vweird.f32 %v253_v18 }
 0x152   : > { %v551_v19 = vpop.eup %550 }
 0x153   : > { %v255_v20 = vmul.f32 %v551_v19, %v253_v18  ;;  %vm261_vm5 = vweird.f32 %v551_v19 }
 0x154   : > { %vm262_vm6 = vmor %vm260_vm4, %vm261_vm5 }
 0x155   : > { %v256_v21 = vmul.f32 %v551_v19, %v255_v20 }
 0x157   : > { %v257_v22 = vmul.f32 0.5, %v256_v21 }
 0x159   : > { %v258_v23 = vsub.f32 1.5, %v257_v22 }
 0x15b   : > { %v259_v24 = vmul.f32 %v551_v19, %v258_v23 }
 0x15d   : > { %v263_v25 = vsel %vm262_vm6, %v551_v19, %v259_v24 }
 0x15e   : > { %266 = vperm.xlu0 %549, %v263_v25   ;;  %v271_v27 = vmul.f32 %v270_v26, %v263_v25 }
 0x166   : > { %274 = vperm.xlu0 %549, %v271_v27  }
 0x1d0   : > { %v267_v28 = vpop.permute.xlu0 %266 }
 0x1d1   : > { %v269_v29 = vmul.f32 %v267_v28, %v216_v2 }
 0x1d8   : > { %v275_v30 = vpop.permute.xlu0 %274 }
 0x1d9   : > { %v277_v31 = vadd.f32 %v275_v30, %v269_v29 }
 0x1db   : > { %v423_v32 = vmul.f32 -1.442695, %v277_v31 }
 0x1dd   : > { %552 = vpow2.f32 %v423_v32 }
 0x1e3   : > { %v553_v33 = vpop.eup %552 }
 0x1e4   : > { %v281_v34 = vadd.f32 1.0, %v553_v33 }
 0x1e6   : > { %554 = vrcp.f32 %v281_v34  ;;  %v293_v38 = vand.u32 2147483648, %v281_v34  ;;  %v291_v40 = vand.u32 2147483647, %v281_v34  ;;  %vm287_vm8 = vweird.f32 %v281_v34 }
 0x1e8   : > { %v294_v42 = vor.u32 1.1754944e-38, %v293_v38  ;;  %vm292_vm10 = vcmp.eq.f32.partialorder %v291_v40, 8.507059e+37 }
 0x1ec   : > { %v555_v35 = vpop.eup %554 }
 0x1ed   : > { %v283_v36 = vmul.f32 %v555_v35, %v281_v34  ;;  %vm288_vm7 = vweird.f32 %v555_v35 }
 0x1ee   : > { %vm289_vm9 = vmor %vm287_vm8, %vm288_vm7 }
 0x1ef   : > { %v284_v37 = vsub.f32 1.0, %v283_v36 }
 0x1f1   : > { %v285_v39 = vmul.f32 %v555_v35, %v284_v37 }
 0x1f3   : > { %v286_v41 = vadd.f32 %v555_v35, %v285_v39 }
 0x1f5   : > { %v290_v43 = vsel %vm289_vm9, %v555_v35, %v286_v41 }
 0x1f6   : > { %v295_v44 = vsel %vm292_vm10, %v294_v42, %v290_v43 }
 0x1f7   : > { %v297_v45 = vmul.f32 %v295_v44, %v277_v31 }
 0x1f9   : > { %298 = vst [vmem:[%s187_s30] sm:$0xff] %v297_v45 }
 0x1fa PF: > { %s307_s28 = smul.u32 %s700_s15, %s704_s16  ;;  %s425_s12 = sshll.u32 %s708_s17, 1 }
 0x1fb   : > { %s315_s23 = sshll.u32 %s187_s30, 4  ;;  %s300_s26 = scalar_lea.sflag [#allocation6], %s185_s19  ;;  %s316_s23 = int_to_ptr.vmem [resolvable:$true] %s315_s23 }
 0x1fc   : > { %s311_s25 = sadd.s32 %s425_s12, %s307_s28  ;;  %s606_s17 = scalar_lea.hbm %s965_s2, 32 }
 0x1fd   : > { %s426_s5 = sshll.u32 %s311_s25, 3 }
 0x1fe   : > { %s313_s7 = scalar_lea.hbm %s965_s2, %s426_s5 }
 0x1ff   : > { %s317_s8 = sshll.u32 %s313_s7, 4  ;;  %s318_s8 = int_to_ptr.hbm [resolvable:$true] %s317_s8 }
 0x200   : > { %s600_s29 = sshra.s32 %s318_s8, 4  ;;  %s601_s29 = int_to_ptr.hbm [resolvable:$true] %s600_s29 }
 0x201   : > { %s602_s0 = scalar_lea.hbm %s601_s29, 8  ;;  %p607_p4 = scmp.lt.s32.totalorder %s601_s29, %s965_s2 }
 0x202   : > { %p603_p13 = scmp.ne.s32.totalorder %s601_s29, %s602_s0  ;;  %p608_p6 = scmp.lt.s32.totalorder %s606_s17, %s602_s0 }
 0x204   : > { %p604_p1 = pnand %p603_p13, %p845_p0  ;;  %p609_p8 = por %p608_p6, %p607_p4 }
 0x206   : > { %p605_p3 = pneg %p604_p1 }
 0x208   : > { %p610_p9 = pnand %p609_p8, %p605_p3 }
 0x20a   : > { %613 = shalt.err (!%p610_p9)
}
 0x20b   : > { %431 = dma.vmem_to_hbm [thread:$0]  (%p845_p0), %s316_s23, 128, %s318_s8, %s300_s26  }
 0x20c PF: > { %p442_p5 = scmp.ge.s32.totalorder %s724_s21, 2  ;;  %s329_s19 = sand.u32 1, %s676_s9  }
 0x20d   : > { %s330_s28 = scalar_lea.sflag [#allocation6], %s329_s19 }
 0x20e   : > { %p438_p10 = pnand %p442_p5, %p859_p2 }
 0x210   : > { %p439_p11 = pneg %p438_p10 }
 0x212   : > { %671 = dma.done.wait (%p439_p11), %s330_s28, 128  }
 0x213   : > { %673 = vsyncadd (%p439_p11), %s330_s28, 4294967168  ;;  %s18_s21 = sadd.s32 1, %s724_s21   ;;  %s983_s27 = sld [smem:[#allocation14_spill]] }
 0x214   : > { %p919_p7 = scmp.ge.s32.totalorder %s18_s21, 10   ;;  %s984_s16 = sld [smem:[#allocation10_spill]] }
 0x215   : > { %s985_s22 = sld [smem:[#allocation11_spill]]  ;;  %s988_s9 = smov %s680_s10 }
 0x216   : > { %s986_s19 = sld [smem:[#allocation12_spill]]  ;;  %s989_s10 = smov %s684_s11 }
 0x217   : > { %s987_s23 = sld [smem:[#allocation13_spill]]  ;;  %s990_s11 = smov %s857_s3 }
 0x218   : > { %s991_s12 = smov %s692_s13  ;;  %s992_s13 = smov %s696_s14 }
 0x219   : > { %s993_s14 = smov %s983_s27  ;;  %s994_s15 = smov %s712_s18 }
 0x21a   : > { %s995_s17 = smov %s720_s20  ;;  %17 = sbr.rel (!%p919_p7) target bundleno = 12 (0xc), region = 85 }
 0x21b   : > { %s996_s18 = smov %s985_s22 }
 0x21d   : > { %s997_s20 = smov %s987_s23 }
 0x21f   :  { %336 = vsyncpa [#allocation5], 1 }
 0x220   :  { %338 = vsyncpa [#allocation5 + $0x1], 1 }
 0x221   :  { %339 = vsyncpa [#allocation6], 1 }
 0x222   :  { %341 = vsyncpa [#allocation6 + $0x1], 1 }

</bundles_post_ra>
